<compile_context>
chip_gen: v5e
topology: v5e:2x2
jax: 0.10.0
libtpu: 0.0.40
codegen_flags: <defaults>
</compile_context>

<pallas_src>
import functools
import math

import jax
import jax.numpy as jnp
from jax.experimental import pallas as pl
from jax.experimental.pallas import tpu as pltpu


_MIN_PALLAS_BYTES = 256 * 1024  # below this, XLA's fused add wins over a launch


# ----------------------------------------------------------------------------
# Parameter / buffer setup (equivalent of PositionalEncoding.__init__)
# ----------------------------------------------------------------------------
def make_positional_encoding_table(d_model: int, max_len: int = 5000) -> jnp.ndarray:
    """Returns pe of shape [max_len, d_model], float32 (PyTorch stores it as
    [max_len, 1, d_model]; the size-1 batch axis is just broadcasting)."""
    position = jnp.arange(0, max_len, dtype=jnp.float32)[:, None]          # [L, 1]
    div_term = jnp.exp(
        jnp.arange(0, d_model, 2, dtype=jnp.float32) * (-math.log(10000.0) / d_model)
    )                                                                       # [D/2]
    angles = position * div_term                                            # [L, D/2]
    pe = jnp.zeros((max_len, d_model), dtype=jnp.float32)
    pe = pe.at[:, 0::2].set(jnp.sin(angles))
    pe = pe.at[:, 1::2].set(jnp.cos(angles))
    return pe


# ----------------------------------------------------------------------------
# Pallas kernels
# ----------------------------------------------------------------------------
def _posenc_eval_kernel(x_ref, pe_ref, o_ref):
    # x_ref/o_ref: (tS, B, D); pe_ref: (tS, 1, D).  The size-1 batch axis
    # broadcasts inside the add (sublane broadcast) -- no materialized repeat.
    o_ref[...] = (x_ref[...] + pe_ref[...]).astype(o_ref.dtype)


def _posenc_dropout_kernel(x_ref, pe_ref, o_ref, *, threshold, scale, seed):
    # Training-mode nn.Dropout(p): drop with prob p, scale survivors by 1/(1-p).
    # Distinct PRNG stream per grid step.
    pltpu.prng_seed(seed, pl.program_id(0))
    # Lane-dense random bits matching the data tile exactly.
    bits = pltpu.bitcast(pltpu.prng_random_bits(x_ref.shape), jnp.uint32)
    # Add + dropout stay in the input dtype (bf16-native on v6e/v7x; Mosaic
    # upcasts internally on v5e).  Single select, no separate mask array.
    y = x_ref[...] + pe_ref[...]
    scale_c = jnp.asarray(scale, dtype=y.dtype)
    o_ref[...] = jnp.where(
        bits >= jnp.uint32(threshold), y * scale_c, jnp.zeros((), dtype=y.dtype)
    ).astype(o_ref.dtype)


# ----------------------------------------------------------------------------
# VMEM-aware sequence-tile selection
# ----------------------------------------------------------------------------
def _choose_seq_tile(S, B, D, itemsize, *, dropout):
    """Pick tS (sequence positions per block) and the scoped VMEM limit,
    sized per-generation via pltpu.get_tpu_info()."""
    try:
        vmem_cap = int(pltpu.get_tpu_info().vmem_capacity_bytes)
    except Exception:
        vmem_cap = 64 * 1024 * 1024            # conservative (v7x-sized) fallback
    # Scoped VMEM to request: half the per-core capacity (32 MiB on v7x,
    # 64 MiB on v5e/v6e), capped at 96 MiB.
    vmem_limit = int(min(max(vmem_cap // 2, 16 << 20), 96 << 20))
    budget = (vmem_limit * 3) // 4             # ~25% headroom for the compiler

    # Second-to-last block dim is B; Mosaic pads it to a multiple of 8
    # sublanes in VMEM, so budget with the padded value.
    b_pad = -(-B // 8) * 8

    # Per sequence position, path-specific:
    #   eval: x-in + out, double-buffered each, plus the tiny pe tile.
    per_row = 4 * b_pad * D * itemsize + 2 * 8 * D * itemsize
    if dropout:
        #   dropout adds u32 random bits + an (x+pe) temp in the compute dtype.
        per_row += b_pad * D * (4 + 2 * itemsize)
    t_vmem = max(1, budget // per_row)

    # Cap an individual buffer: ~6 MiB on v7x-sized VMEM, ~12 MiB on v5e/v6e.
    blk_cap = (6 << 20) if vmem_cap <= (64 << 20) else (12 << 20)
    t_blk = max(1, blk_cap // (b_pad * D * itemsize))

    # Grid shaping: aim for >= 8 grid steps (DMA/compute overlap + both v7x
    # TensorCores busy), but never shrink a block below ~512 flat sublane rows.
    t_steps = -(-S // 8)                       # ceil(S / 8) -> ~8 steps
    t_floor = -(-512 // B)                     # seq rows giving ~512 flat rows
    tS = min(max(t_steps, t_floor), t_vmem, t_blk, S)
    return max(tS, 1), vmem_limit


# ----------------------------------------------------------------------------
# Wrapper (equivalent of PositionalEncoding.forward)
# ----------------------------------------------------------------------------
def positional_encoding_forward(x, pe, *, dropout_p: float = 0.1,
                                training: bool = False, seed: int = 0):
    """x: [S, B, D]; pe: [max_len, D] float32 table. Returns [S, B, D]."""
    S, B, D = x.shape
    if training and dropout_p >= 1.0:
        return jnp.zeros_like(x)               # degenerate dropout: drop everything

    pe_s = pe[:S].astype(x.dtype)              # pe[:x.size(0)], pre-cast to x dtype
    itemsize = jnp.dtype(x.dtype).itemsize
    total_bytes = S * B * D * itemsize
    use_dropout = training and dropout_p > 0.0

    # Bypass: tiny inputs (launch + pipeline prologue > HBM time) and
    # non-lane-dense D (would hit masked vst.msk stores) go through XLA.
    if total_bytes < _MIN_PALLAS_BYTES or (D % 128) != 0:
        y = x + pe_s[:, None, :]
        if use_dropout:
            keep = jax.random.bernoulli(jax.random.PRNGKey(seed), 1.0 - dropout_p,
                                        y.shape)
            y = jnp.where(keep, y * (1.0 / (1.0 - dropout_p)), 0.0)
        return y.astype(x.dtype)

    # TODO(synk): for B <= 4, synthesize the pe tile in-kernel (iota + sin/cos
    # on the idle EUP) to drop the extra 1/B-sized HBM read of pe.
    pe3 = pe_s[:, None, :]                     # (S, 1, D), matches the pe buffer layout

    tS, vmem_limit = _choose_seq_tile(S, B, D, itemsize, dropout=use_dropout)
    grid = (pl.cdiv(S, tS),)

    if use_dropout:
        threshold = min(int(round(dropout_p * 4294967296.0)), 4294967295)
        kernel = functools.partial(_posenc_dropout_kernel, threshold=threshold,
                                   scale=1.0 / (1.0 - dropout_p), seed=seed)
    else:
        kernel = _posenc_eval_kernel

    cost = pl.CostEstimate(
        flops=S * B * D,
        transcendentals=0,
        bytes_accessed=(2 * S * B * D + S * D) * itemsize,
    )

    out = pl.pallas_call(
        kernel,
        out_shape=jax.ShapeDtypeStruct((S, B, D), x.dtype),
        grid_spec=pl.GridSpec(
            grid=grid,
            in_specs=[
                pl.BlockSpec((tS, B, D), lambda i: (i, 0, 0)),   # x seq-tile
                pl.BlockSpec((tS, 1, D), lambda i: (i, 0, 0)),   # pe seq-tile (broadcast over B)
            ],
            out_specs=pl.BlockSpec((tS, B, D), lambda i: (i, 0, 0)),
        ),
        compiler_params=pltpu.CompilerParams(
            dimension_semantics=("parallel",),
            vmem_limit_bytes=vmem_limit,
        ),
        cost_estimate=cost,
    )(x, pe3)
    return out


# ----------------------------------------------------------------------------
# Demo / smoke test
# ----------------------------------------------------------------------------
if __name__ == "__main__":
    # Large enough to take the Pallas path (multi-step grid), still small overall.
    seq_len, batch, d_model = 256, 8, 256
    max_len = 512                              # semantics identical to 5000 for S <= max_len

    key = jax.random.PRNGKey(0)
    x = jax.random.normal(key, (seq_len, batch, d_model), dtype=jnp.float32)
    pe = make_positional_encoding_table(d_model, max_len)
    ref = x + pe[:seq_len][:, None, :]

    # Inference-mode forward (nn.Dropout is identity in eval()).
    out = positional_encoding_forward(x, pe, dropout_p=0.1, training=False)
    out = jax.block_until_ready(out)
    assert out.shape == (seq_len, batch, d_model)
    assert jnp.allclose(out, ref, atol=1e-6), "mismatch vs reference (eval path)"

    # Tiny-input bypass path correctness check.
    xs = jax.random.normal(jax.random.PRNGKey(1), (8, 2, 32), dtype=jnp.float32)
    pes = make_positional_encoding_table(32, 16)
    outs = positional_encoding_forward(xs, pes, dropout_p=0.1, training=False)
    assert jnp.allclose(outs, xs + pes[:8][:, None, :], atol=1e-6), "bypass mismatch"

    # Training-mode dropout uses the TPU hardware PRNG (pltpu.prng_*), which has
    # no CPU / interpret-mode lowering -> only exercise it on a real TPU backend.
    if jax.default_backend() == "tpu":
        p = 0.1
        out_tr = positional_encoding_forward(x, pe, dropout_p=p,
                                             training=True, seed=123)
        out_tr = jax.block_until_ready(out_tr)
        assert out_tr.shape == (seq_len, batch, d_model)
        assert bool(jnp.isfinite(out_tr).all())
        kept = out_tr != 0
        frac = float(kept.mean())
        assert 0.85 < frac < 0.95, f"dropout keep fraction off: {frac}"
        expected = jnp.where(kept, ref * jnp.float32(1.0 / (1.0 - p)), 0.0)
        assert jnp.allclose(out_tr, expected, atol=1e-5), "dropout survivors mismatch"

    print("KERNEL_OK")
</pallas_src>

<mosaic_0001>
module attributes {stable_mosaic.version = 11 : i64} {
  func.func @_posenc_eval_kernel(%arg0: i32, %arg1: memref<64x8x256xf32, #tpu.memory_space<vmem>>, %arg2: memref<64x1x256xf32, #tpu.memory_space<vmem>>, %arg3: memref<64x8x256xf32, #tpu.memory_space<vmem>>) attributes {dimension_semantics = [#tpu.dimension_semantics<parallel>], iteration_bounds = array<i64: 4>, scalar_prefetch = 0 : i64, scratch_operands = 0 : i64, tpu.core_type = #tpu.core_type<tc>, window_params = [{transform_indices = @transform_0, window_bounds = array<i64: 64, 8, 256>}, {transform_indices = @transform_1, window_bounds = array<i64: 64, 1, 256>}, {transform_indices = @transform_2, window_bounds = array<i64: 64, 8, 256>}]} {
    %c0 = arith.constant 0 : index
    %c0_0 = arith.constant 0 : index
    %c0_1 = arith.constant 0 : index
    %0 = vector.load %arg1[%c0, %c0_0, %c0_1] : memref<64x8x256xf32, #tpu.memory_space<vmem>>, vector<64x8x256xf32>
    %c0_2 = arith.constant 0 : index
    %c0_3 = arith.constant 0 : index
    %c0_4 = arith.constant 0 : index
    %1 = vector.load %arg2[%c0_2, %c0_3, %c0_4] : memref<64x1x256xf32, #tpu.memory_space<vmem>>, vector<64x1x256xf32>
    %2 = vector.broadcast %1 : vector<64x1x256xf32> to vector<64x8x256xf32>
    %3 = arith.addf %0, %2 : vector<64x8x256xf32>
    %c0_5 = arith.constant 0 : index
    %c0_6 = arith.constant 0 : index
    %c0_7 = arith.constant 0 : index
    %4 = vector.load %arg3[%c0_5, %c0_6, %c0_7] : memref<64x8x256xf32, #tpu.memory_space<vmem>>, vector<64x8x256xf32>
    tpu.vector_store %arg3[%c0_5, %c0_6, %c0_7], %3 {strides = array<i32>} : memref<64x8x256xf32, #tpu.memory_space<vmem>>, vector<64x8x256xf32>,
    return
  }
  func.func @transform_0(%arg0: i32) -> (i32, i32, i32) {
    %c0_i32 = arith.constant 0 : i32
    %c0_i32_0 = arith.constant 0 : i32
    %c0_i32_1 = arith.constant 0 : i32
    return %arg0, %c0_i32, %c0_i32_0 : i32, i32, i32
  }
  func.func @transform_1(%arg0: i32) -> (i32, i32, i32) {
    %c0_i32 = arith.constant 0 : i32
    %c0_i32_0 = arith.constant 0 : i32
    %c0_i32_1 = arith.constant 0 : i32
    return %arg0, %c0_i32, %c0_i32_0 : i32, i32, i32
  }
  func.func @transform_2(%arg0: i32) -> (i32, i32, i32) {
    %c0_i32 = arith.constant 0 : i32
    %c0_i32_0 = arith.constant 0 : i32
    %c0_i32_1 = arith.constant 0 : i32
    return %arg0, %c0_i32, %c0_i32_0 : i32, i32, i32
  }
}

</mosaic_0001>

<bundles_post_ra>
// kernel: tpu_custom_call.1
= control target key start
LH: loop header
LB: loop body
LE: loop exit
PB: predicated region body
PF: predicated region fallthrough
CT: control target
= control target key end

     0   :  { %7 = vsyncpa [#allocation3], 0  ;;  %s1818_s0 = inlined_call_operand.hbm [shape: f32[256,8,256], index: 0, kind: input, shape index: {}]   ;;  %s1819_s1 = inlined_call_operand.hbm [shape: f32[256,1,256], index: 1, kind: input, shape index: {}]   ;;  %s1820_s2 = inlined_call_operand.hbm [shape: f32[256,8,256], index: 2, kind: output, shape index: {}]  }
   0x1   :  { %9 = vsyncpa [#allocation3 + $0x1], 0 }
   0x2   :  { %10 = vsyncpa [#allocation6], 0 }
   0x3   :  { %12 = vsyncpa [#allocation6 + $0x1], 0 }
   0x4   :  { %13 = vsyncpa [#allocation4], 0 }
   0x5   :  { %15 = vsyncpa [#allocation4 + $0x1], 0  ;;  %s1326_s9 = smov 0   ;;  %s1328_s10 = smov 0  }
   0x6   :  { %s1330_s11 = smov 0   ;;  %s1332_s12 = smov 0  }
   0x7 LB: > { %s1347_s13 = sadd.s32 4294967295, %s1303_s12   ;;  %s1091_s14 = sadd.s32 4294967294, %s1303_s12   ;;  %s1303_s12 = sphi %s1332_s12, %s1830_s12   ;;  %s1299_s11 = sphi %s1330_s11, %s1829_s11   ;;  %s1295_s10 = sphi %s1328_s10, %s1828_s10   ;;  %s1291_s9 = sphi %s1326_s9, %s1827_s9  }
   0x8   : > { %s1351_s15 = sadd.s32 1, %s1303_s12   ;;  %s28_s16 = sadd.s32 1, %s1299_s11 }
   0x9   : > { %s25_s17 = ssub.s32 %s1303_s12, %s1351_s15  ;;  %p35_p0 = scmp.ne.s32.totalorder %s1299_s11, %s1295_s10 }
   0xa   : > { %p26_p1 = scmp.eq.s32.totalorder %s25_s17, 0  ;;  %p36_p2 = scmp.eq.s32.totalorder %s1303_s12, 0 }
   0xb   : > { %p41_p3 = scmp.ne.s32.totalorder %s1295_s10, %s1291_s9  ;;  %p42_p4 = scmp.eq.s32.totalorder %s1347_s13, 0 }
   0xc   : > { %s1363_s18 = scalar_select %p26_p1, %s1299_s11, %s28_s16  }
   0xd   : > { %p1365_p5 = por %p36_p2, %p35_p0  ;;  %p1369_p6 = por %p42_p4, %p41_p3 }
   0xe   : > { %p91_p7 = scmp.eq.s32.totalorder %s1347_s13, 3  ;;  %p97_p8 = scmp.eq.s32.totalorder %s1091_s14, 3 }
   0xf   : > { %p1133_p9 = scmp.lt.s32.totalorder %s1303_s12, 4  ;;  %s1384_s23 = sand.u32 1, %s1299_s11  }
  0x10   : > { %p1375_p10 = por %p91_p7, %p35_p0  ;;  %p1379_p11 = por %p97_p8, %p41_p3 }
  0x11   : > { %s1112_s24 = sshll.u32 %s1303_s12, 10  ;;  %s1094_s25 = sshll.u32 %s1384_s23, 10 }
  0x12   : > { %s127_s28 = scalar_lea.hbm %s1818_s0, %s1112_s24  ;;  %s121_s30 = scalar_lea.vmem [#allocation2], %s1094_s25 }
  0x13   : > { %s128_s29 = sshll.u32 %s127_s28, 4  ;;  %s130_s3 = sshll.u32 %s121_s30, 4  ;;  %s129_s29 = int_to_ptr.hbm [resolvable:$true] %s128_s29  ;;  %s131_s3 = int_to_ptr.vmem [resolvable:$true] %s130_s3 }
  0x14   : > { %p1393_p12 = pnand %p1133_p9, %p1365_p5  ;;  %p1101_p13 = scmp.ge.s32.totalorder %s1303_s12, 1 }
  0x15   : > { %p160_p0 = scmp.lt.s32.totalorder %s1303_s12, 5  ;;  %s118_s5 = scalar_lea.sflag [#allocation3], %s1384_s23 }
  0x16   : > { %s1173_s6 = sshra.s32 %s129_s29, 4  ;;  %p1177_p2 = pneg %p1393_p12  ;;  %s1174_s6 = int_to_ptr.hbm [resolvable:$true] %s1173_s6 }
  0x17   : > { %s1175_s7 = scalar_lea.hbm %s1174_s6, 1024  ;;  %s1180_s16 = scalar_lea.hbm %s1818_s0, 4096 }
  0x18   : > { %p1176_p1 = scmp.ne.s32.totalorder %s1174_s6, %s1175_s7  ;;  %p1181_p5 = scmp.lt.s32.totalorder %s1174_s6, %s1818_s0 }
  0x19   : > { %p1182_p7 = scmp.lt.s32.totalorder %s1180_s16, %s1175_s7 }
  0x1a   : > { %p1178_p3 = pnand %p1177_p2, %p1176_p1 }
  0x1b   : > { %p1183_p8 = por %p1182_p7, %p1181_p5 }
  0x1c   : > { %p1179_p4 = pneg %p1178_p3 }
  0x1e   : > { %p1184_p9 = pnand %p1183_p8, %p1179_p4 }
  0x20   : > { %1187 = shalt.err (!%p1184_p9)
}
  0x21   : > { %s1305_s24 = smov 256   ;;  %s1306_s25 = smov 16  }
  0x22   : > { %1125 = dma.hbm_to_vmem [thread:$0]  (!%p1393_p12), %s129_s29, 16384, %s131_s3, %s118_s5, %s1305_s24, %s1305_s24, %s1306_s25  }
  0x23   : > { %p1417_p1 = pnand %p1101_p13, %p160_p0  ;;  %s1098_s27 = sshll.u32 %s1384_s23, 7 }
  0x24   : > { %s1113_s28 = sshll.u32 %s1303_s12, 7  ;;  %s144_s14 = scalar_lea.vmem [#allocation5], %s1098_s27 }
  0x25   : > { %s149_s7 = scalar_lea.hbm %s1819_s1, %s1113_s28  ;;  %s152_s16 = sshll.u32 %s144_s14, 4  ;;  %s153_s16 = int_to_ptr.vmem [resolvable:$true] %s152_s16 }
  0x26   : > { %s150_s8 = sshll.u32 %s149_s7, 4  ;;  %s141_s17 = scalar_lea.sflag [#allocation6], %s1384_s23  ;;  %s151_s8 = int_to_ptr.hbm [resolvable:$true] %s150_s8 }
  0x27   : > { %s1203_s19 = sshra.s32 %s151_s8, 4  ;;  %s1210_s24 = scalar_lea.hbm %s1819_s1, 512  ;;  %s1204_s19 = int_to_ptr.hbm [resolvable:$true] %s1203_s19 }
  0x28   : > { %s1205_s29 = scalar_lea.hbm %s1204_s19, 128  ;;  %p1211_p4 = scmp.lt.s32.totalorder %s1204_s19, %s1819_s1 }
  0x29   : > { %p1206_p3 = scmp.ne.s32.totalorder %s1204_s19, %s1205_s29  ;;  %p1212_p5 = scmp.lt.s32.totalorder %s1210_s24, %s1205_s29 }
  0x2b   : > { %p1208_p13 = pnand %p1206_p3, %p1177_p2  ;;  %p1213_p7 = por %p1212_p5, %p1211_p4 }
  0x2d   : > { %p1209_p0 = pneg %p1208_p13 }
  0x2f   : > { %p1214_p8 = pnand %p1213_p7, %p1209_p0 }
  0x31   : > { %1217 = shalt.err (!%p1214_p8)
}
  0x32   : > { %s1307_s23 = smov 32   ;;  %s1308_s27 = smov 2  }
  0x33   : > { %1128 = dma.hbm_to_vmem [thread:$0]  (!%p1393_p12), %s151_s8, 2048, %s153_s16, %s141_s17, %s1307_s23, %s1307_s23, %s1308_s27  }
  0x34   : > { %164 = sbr.rel (%p1417_p1) target bundleno = 198 (0xc6), region = 28  ;;  %s1441_s30 = sand.u32 (!%p1417_p1), 1, %s1295_s10  }
  0x35   : > { %s1102_s6 = sshll.u32 (!%p1417_p1), %s1441_s30, 10  ;;  %s167_s7 = scalar_lea.sflag (!%p1417_p1), [#allocation3], %s1441_s30 }
  0x36   : > { %s1447_s14 = scalar_lea.vmem (!%p1417_p1), [#allocation2], %s1102_s6 }
  0x39   : > { %1278 = dma.done.wait (%p1369_p6), %s167_s7, 16384  }
  0x3a   : > { %1280 = vsyncadd (%p1369_p6), %s167_s7, 4294950912  ;;  %s1103_s4 = sshll.u32 %s1441_s30, 7  ;;  %s177_s26 = scalar_lea.sflag [#allocation6], %s1441_s30 }
  0x3b   : > { %s1455_s8 = scalar_lea.vmem [#allocation5], %s1103_s4 }
  0x3c   : > { %1282 = dma.done.wait (%p1369_p6), %s177_s26, 2048  }
  0x3d   : > { %1284 = vsyncadd (%p1369_p6), %s177_s26, 4294965248  ;;  %v210_v0 = vld [vmem:[%s1447_s14] sm:$0xff]  ;;  %v211_v2 = vld [vmem:[%s1447_s14 + $0x8] sm:$0xff]  ;;  %s1475_s20 = scalar_lea.vmem [#allocation7], %s1102_s6  ;;  %s1115_s16 = sshll.u32 %s1347_s13, 10 }
  0x3e   : > { %v338_v1 = vld [vmem:[%s1455_s8] sm:$0x3]  ;;  %v212_v5 = vld [vmem:[%s1447_s14 + $0x10] sm:$0xff]  ;;  %v339_v6 = vld [vmem:[%s1455_s8 + $0x2] sm:$0x3]  ;;  %s991_s19 = scalar_lea.hbm %s1820_s2, %s1115_s16  ;;  %s992_s29 = sshll.u32 %s1475_s20, 4  ;;  %s993_s29 = int_to_ptr.vmem [resolvable:$true] %s992_s29 }
  0x3f   : > { %v466_v3 = vperm.slane %v338_v1, 0  ;;  %v467_v4 = vperm.slane %v338_v1, 1  ;;  %v213_v7 = vld [vmem:[%s1447_s14 + $0x18] sm:$0xff]  ;;  %v468_v8 = vperm.slane %v339_v6, 0  ;;  %v469_v9 = vperm.slane %v339_v6, 1  ;;  %v214_v10 = vld [vmem:[%s1447_s14 + $0x20] sm:$0xff] }
  0x40   : > { %v340_v11 = vld [vmem:[%s1455_s8 + $0x4] sm:$0x3]  ;;  %v215_v15 = vld [vmem:[%s1447_s14 + $0x28] sm:$0xff]  ;;  %v341_v17 = vld [vmem:[%s1455_s8 + $0x6] sm:$0x3]  ;;  %s994_s3 = sshll.u32 %s991_s19, 4  ;;  %s995_s3 = int_to_ptr.hbm [resolvable:$true] %s994_s3 }
  0x41   : > { %v722_v12 = vadd.f32 %v466_v3, %v210_v0  ;;  %v723_v13 = vadd.f32 %v467_v4, %v211_v2  ;;  %v470_v14 = vperm.slane %v340_v11, 0  ;;  %v471_v16 = vperm.slane %v340_v11, 1  ;;  %v216_v20 = vld [vmem:[%s1447_s14 + $0x30] sm:$0xff]  ;;  %v342_v23 = vld [vmem:[%s1455_s8 + $0x8] sm:$0x3]  ;;  %v217_v25 = vld [vmem:[%s1447_s14 + $0x38] sm:$0xff] }
  0x42   : > { %v724_v18 = vadd.f32 %v468_v8, %v212_v5  ;;  %v725_v19 = vadd.f32 %v469_v9, %v213_v7  ;;  %v472_v21 = vperm.slane %v341_v17, 0  ;;  %v473_v22 = vperm.slane %v341_v17, 1  ;;  %v343_v27 = vld [vmem:[%s1455_s8 + $0xa] sm:$0x3]  ;;  %v218_v29 = vld [vmem:[%s1447_s14 + $0x40] sm:$0xff]  ;;  %v220_v36 = vld [vmem:[%s1447_s14 + $0x50] sm:$0xff] }
  0x43   : > { %850 = vst [vmem:[%s1475_s20] sm:$0xff] %v722_v12  ;;  %v726_v24 = vadd.f32 %v470_v14, %v214_v10  ;;  %v474_v26 = vperm.slane %v342_v23, 0  ;;  %v727_v28 = vadd.f32 %v471_v16, %v215_v15  ;;  %v475_v30 = vperm.slane %v342_v23, 1  ;;  %v344_v31 = vld [vmem:[%s1455_s8 + $0xc] sm:$0x3]  ;;  %v345_v38 = vld [vmem:[%s1455_s8 + $0xe] sm:$0x3] }
  0x44   : > { %851 = vst [vmem:[%s1475_s20 + $0x8] sm:$0xff] %v723_v13  ;;  %v728_v32 = vadd.f32 %v472_v21, %v216_v20  ;;  %v219_v33 = vld [vmem:[%s1447_s14 + $0x48] sm:$0xff]  ;;  %v476_v34 = vperm.slane %v343_v27, 0  ;;  %v729_v35 = vadd.f32 %v473_v22, %v217_v25  ;;  %v477_v37 = vperm.slane %v343_v27, 1  ;;  %v221_v40 = vld [vmem:[%s1447_s14 + $0x58] sm:$0xff]  ;;  %v222_v43 = vld [vmem:[%s1447_s14 + $0x60] sm:$0xff] }
  0x45   : > { %852 = vst [vmem:[%s1475_s20 + $0x10] sm:$0xff] %v724_v18  ;;  %v730_v39 = vadd.f32 %v474_v26, %v218_v29  ;;  %v478_v41 = vperm.slane %v344_v31, 0  ;;  %v731_v42 = vadd.f32 %v475_v30, %v219_v33  ;;  %v479_v44 = vperm.slane %v344_v31, 1  ;;  %v346_v45 = vld [vmem:[%s1455_s8 + $0x10] sm:$0x3]  ;;  %v223_v47 = vld [vmem:[%s1447_s14 + $0x68] sm:$0xff] }
  0x46   : > { %853 = vst [vmem:[%s1475_s20 + $0x18] sm:$0xff] %v725_v19  ;;  %v732_v46 = vadd.f32 %v476_v34, %v220_v36  ;;  %v480_v48 = vperm.slane %v345_v38, 0  ;;  %v733_v49 = vadd.f32 %v477_v37, %v221_v40  ;;  %v224_v50 = vld [vmem:[%s1447_s14 + $0x70] sm:$0xff]  ;;  %v481_v51 = vperm.slane %v345_v38, 1  ;;  %v225_v54 = vld [vmem:[%s1447_s14 + $0x78] sm:$0xff]  ;;  %v226_v57 = vld [vmem:[%s1447_s14 + $0x80] sm:$0xff] }
  0x47   : > { %854 = vst [vmem:[%s1475_s20 + $0x20] sm:$0xff] %v726_v24  ;;  %v347_v52 = vld [vmem:[%s1455_s8 + $0x12] sm:$0x3]  ;;  %v734_v53 = vadd.f32 %v478_v41, %v222_v43  ;;  %v482_v55 = vperm.slane %v346_v45, 0  ;;  %v735_v56 = vadd.f32 %v479_v44, %v223_v47  ;;  %v483_v58 = vperm.slane %v346_v45, 1  ;;  %v227_v61 = vld [vmem:[%s1447_s14 + $0x88] sm:$0xff] }
  0x48   : > { %855 = vst [vmem:[%s1475_s20 + $0x28] sm:$0xff] %v727_v28  ;;  %v348_v59 = vld [vmem:[%s1455_s8 + $0x14] sm:$0x3]  ;;  %v736_v60 = vadd.f32 %v480_v48, %v224_v50  ;;  %v484_v62 = vperm.slane %v347_v52, 0  ;;  %v737_v63 = vadd.f32 %v481_v51, %v225_v54  ;;  %v485_v1 = vperm.slane %v347_v52, 1  ;;  %v229_v4 = vld [vmem:[%s1447_s14 + $0x98] sm:$0xff] }
  0x49   : > { %856 = vst [vmem:[%s1475_s20 + $0x30] sm:$0xff] %v728_v32  ;;  %v228_v0 = vld [vmem:[%s1447_s14 + $0x90] sm:$0xff]  ;;  %v738_v3 = vadd.f32 %v482_v55, %v226_v57  ;;  %v486_v5 = vperm.slane %v348_v59, 0  ;;  %v739_v6 = vadd.f32 %v483_v58, %v227_v61  ;;  %v230_v7 = vld [vmem:[%s1447_s14 + $0xa0] sm:$0xff]  ;;  %v487_v8 = vperm.slane %v348_v59, 1  ;;  %v231_v11 = vld [vmem:[%s1447_s14 + $0xa8] sm:$0xff] }
  0x4a   : > { %857 = vst [vmem:[%s1475_s20 + $0x38] sm:$0xff] %v729_v35  ;;  %v349_v2 = vld [vmem:[%s1455_s8 + $0x16] sm:$0x3]  ;;  %v350_v9 = vld [vmem:[%s1455_s8 + $0x18] sm:$0x3]  ;;  %v740_v10 = vadd.f32 %v484_v62, %v228_v0  ;;  %v741_v13 = vadd.f32 %v485_v1, %v229_v4  ;;  %v234_v21 = vld [vmem:[%s1447_s14 + $0xc0] sm:$0xff] }
  0x4b   : > { %858 = vst [vmem:[%s1475_s20 + $0x40] sm:$0xff] %v730_v39  ;;  %v488_v12 = vperm.slane %v349_v2, 0  ;;  %v232_v14 = vld [vmem:[%s1447_s14 + $0xb0] sm:$0xff]  ;;  %v489_v15 = vperm.slane %v349_v2, 1  ;;  %v351_v16 = vld [vmem:[%s1455_s8 + $0x1a] sm:$0x3]  ;;  %v742_v17 = vadd.f32 %v486_v5, %v230_v7  ;;  %v743_v20 = vadd.f32 %v487_v8, %v231_v11 }
  0x4c   : > { %859 = vst [vmem:[%s1475_s20 + $0x48] sm:$0xff] %v731_v42  ;;  %v233_v18 = vld [vmem:[%s1447_s14 + $0xb8] sm:$0xff]  ;;  %v490_v19 = vperm.slane %v350_v9, 0  ;;  %v491_v22 = vperm.slane %v350_v9, 1  ;;  %v235_v25 = vld [vmem:[%s1447_s14 + $0xc8] sm:$0xff]  ;;  %v492_v26 = vperm.slane %v351_v16, 0 }
  0x4d   : > { %860 = vst [vmem:[%s1475_s20 + $0x50] sm:$0xff] %v732_v46  ;;  %v352_v23 = vld [vmem:[%s1455_s8 + $0x1c] sm:$0x3]  ;;  %v744_v24 = vadd.f32 %v488_v12, %v232_v14  ;;  %v745_v27 = vadd.f32 %v489_v15, %v233_v18  ;;  %v236_v28 = vld [vmem:[%s1447_s14 + $0xd0] sm:$0xff]  ;;  %v493_v29 = vperm.slane %v351_v16, 1  ;;  %v238_v35 = vld [vmem:[%s1447_s14 + $0xe0] sm:$0xff] }
  0x4e   : > { %861 = vst [vmem:[%s1475_s20 + $0x58] sm:$0xff] %v733_v49  ;;  %v353_v30 = vld [vmem:[%s1455_s8 + $0x1e] sm:$0x3]  ;;  %v746_v31 = vadd.f32 %v490_v19, %v234_v21  ;;  %v494_v33 = vperm.slane %v352_v23, 0  ;;  %v747_v34 = vadd.f32 %v491_v22, %v235_v25  ;;  %v495_v36 = vperm.slane %v352_v23, 1  ;;  %v239_v39 = vld [vmem:[%s1447_s14 + $0xe8] sm:$0xff] }
  0x4f   : > { %862 = vst [vmem:[%s1475_s20 + $0x60] sm:$0xff] %v734_v53  ;;  %v237_v32 = vld [vmem:[%s1447_s14 + $0xd8] sm:$0xff]  ;;  %v354_v37 = vld [vmem:[%s1455_s8 + $0x20] sm:$0x3]  ;;  %v748_v38 = vadd.f32 %v492_v26, %v236_v28  ;;  %v496_v40 = vperm.slane %v353_v30, 0  ;;  %v240_v42 = vld [vmem:[%s1447_s14 + $0xf0] sm:$0xff] }
  0x50   : > { %863 = vst [vmem:[%s1475_s20 + $0x68] sm:$0xff] %v735_v56  ;;  %v749_v41 = vadd.f32 %v493_v29, %v237_v32  ;;  %v497_v43 = vperm.slane %v353_v30, 1  ;;  %v355_v44 = vld [vmem:[%s1455_s8 + $0x22] sm:$0x3]  ;;  %v750_v45 = vadd.f32 %v494_v33, %v238_v35  ;;  %v241_v46 = vld [vmem:[%s1447_s14 + $0xf8] sm:$0xff]  ;;  %v498_v47 = vperm.slane %v354_v37, 0 }
  0x51   : > { %864 = vst [vmem:[%s1475_s20 + $0x70] sm:$0xff] %v736_v60  ;;  %v751_v48 = vadd.f32 %v495_v36, %v239_v39  ;;  %v242_v49 = vld [vmem:[%s1447_s14 + $0x100] sm:$0xff]  ;;  %v499_v50 = vperm.slane %v354_v37, 1  ;;  %v752_v52 = vadd.f32 %v496_v40, %v240_v42  ;;  %v243_v53 = vld [vmem:[%s1447_s14 + $0x108] sm:$0xff]  ;;  %v500_v54 = vperm.slane %v355_v44, 0  ;;  %v244_v56 = vld [vmem:[%s1447_s14 + $0x110] sm:$0xff] }
  0x52   : > { %865 = vst [vmem:[%s1475_s20 + $0x78] sm:$0xff] %v737_v63  ;;  %v356_v51 = vld [vmem:[%s1455_s8 + $0x24] sm:$0x3]  ;;  %v753_v55 = vadd.f32 %v497_v43, %v241_v46  ;;  %v501_v57 = vperm.slane %v355_v44, 1  ;;  %v357_v58 = vld [vmem:[%s1455_s8 + $0x26] sm:$0x3]  ;;  %v754_v59 = vadd.f32 %v498_v47, %v242_v49 }
  0x53   : > { %866 = vst [vmem:[%s1475_s20 + $0x80] sm:$0xff] %v738_v3  ;;  %v245_v60 = vld [vmem:[%s1447_s14 + $0x118] sm:$0xff]  ;;  %v502_v61 = vperm.slane %v356_v51, 0  ;;  %v755_v62 = vadd.f32 %v499_v50, %v243_v53  ;;  %v246_v63 = vld [vmem:[%s1447_s14 + $0x120] sm:$0xff]  ;;  %v503_v0 = vperm.slane %v356_v51, 1  ;;  %v756_v2 = vadd.f32 %v500_v54, %v244_v56  ;;  %v247_v3 = vld [vmem:[%s1447_s14 + $0x128] sm:$0xff] }
  0x54   : > { %867 = vst [vmem:[%s1475_s20 + $0x88] sm:$0xff] %v739_v6  ;;  %v358_v1 = vld [vmem:[%s1455_s8 + $0x28] sm:$0x3]  ;;  %v504_v4 = vperm.slane %v357_v58, 0  ;;  %v757_v5 = vadd.f32 %v501_v57, %v245_v60  ;;  %v248_v6 = vld [vmem:[%s1447_s14 + $0x130] sm:$0xff]  ;;  %v505_v7 = vperm.slane %v357_v58, 1 }
  0x55   : > { %868 = vst [vmem:[%s1475_s20 + $0x90] sm:$0xff] %v740_v10  ;;  %v359_v8 = vld [vmem:[%s1455_s8 + $0x2a] sm:$0x3]  ;;  %v758_v9 = vadd.f32 %v502_v61, %v246_v63  ;;  %v249_v10 = vld [vmem:[%s1447_s14 + $0x138] sm:$0xff]  ;;  %v506_v11 = vperm.slane %v358_v1, 0  ;;  %v759_v12 = vadd.f32 %v503_v0, %v247_v3  ;;  %v507_v14 = vperm.slane %v358_v1, 1 }
  0x56   : > { %869 = vst [vmem:[%s1475_s20 + $0x98] sm:$0xff] %v741_v13  ;;  %v250_v13 = vld [vmem:[%s1447_s14 + $0x140] sm:$0xff]  ;;  %v360_v15 = vld [vmem:[%s1455_s8 + $0x2c] sm:$0x3]  ;;  %v760_v16 = vadd.f32 %v504_v4, %v248_v6  ;;  %v508_v18 = vperm.slane %v359_v8, 0  ;;  %v761_v19 = vadd.f32 %v505_v7, %v249_v10  ;;  %v509_v21 = vperm.slane %v359_v8, 1 }
  0x57   : > { %870 = vst [vmem:[%s1475_s20 + $0xa0] sm:$0xff] %v742_v17  ;;  %v251_v17 = vld [vmem:[%s1447_s14 + $0x148] sm:$0xff]  ;;  %v762_v23 = vadd.f32 %v506_v11, %v250_v13  ;;  %v510_v25 = vperm.slane %v360_v15, 0  ;;  %v511_v28 = vperm.slane %v360_v15, 1  ;;  %v362_v29 = vld [vmem:[%s1455_s8 + $0x30] sm:$0x3] }
  0x58   : > { %871 = vst [vmem:[%s1475_s20 + $0xa8] sm:$0xff] %v743_v20  ;;  %v252_v20 = vld [vmem:[%s1447_s14 + $0x150] sm:$0xff]  ;;  %v361_v22 = vld [vmem:[%s1455_s8 + $0x2e] sm:$0x3]  ;;  %v763_v26 = vadd.f32 %v507_v14, %v251_v17  ;;  %v514_v39 = vperm.slane %v362_v29, 0  ;;  %v515_v42 = vperm.slane %v362_v29, 1 }
  0x59   : > { %872 = vst [vmem:[%s1475_s20 + $0xb0] sm:$0xff] %v744_v24  ;;  %v253_v24 = vld [vmem:[%s1447_s14 + $0x158] sm:$0xff]  ;;  %v764_v30 = vadd.f32 %v508_v18, %v252_v20  ;;  %v512_v32 = vperm.slane %v361_v22, 0  ;;  %v513_v35 = vperm.slane %v361_v22, 1  ;;  %v363_v36 = vld [vmem:[%s1455_s8 + $0x32] sm:$0x3] }
  0x5a   : > { %873 = vst [vmem:[%s1475_s20 + $0xb8] sm:$0xff] %v745_v27  ;;  %v254_v27 = vld [vmem:[%s1447_s14 + $0x160] sm:$0xff]  ;;  %v765_v33 = vadd.f32 %v509_v21, %v253_v24  ;;  %v364_v43 = vld [vmem:[%s1455_s8 + $0x34] sm:$0x3]  ;;  %v516_v46 = vperm.slane %v363_v36, 0  ;;  %v517_v49 = vperm.slane %v363_v36, 1 }
  0x5b   : > { %874 = vst [vmem:[%s1475_s20 + $0xc0] sm:$0xff] %v746_v31  ;;  %v255_v31 = vld [vmem:[%s1447_s14 + $0x168] sm:$0xff]  ;;  %v766_v37 = vadd.f32 %v510_v25, %v254_v27  ;;  %v365_v50 = vld [vmem:[%s1455_s8 + $0x36] sm:$0x3]  ;;  %v518_v53 = vperm.slane %v364_v43, 0  ;;  %v519_v56 = vperm.slane %v364_v43, 1 }
  0x5c   : > { %875 = vst [vmem:[%s1475_s20 + $0xc8] sm:$0xff] %v747_v34  ;;  %v256_v34 = vld [vmem:[%s1447_s14 + $0x170] sm:$0xff]  ;;  %v767_v40 = vadd.f32 %v511_v28, %v255_v31  ;;  %v366_v57 = vld [vmem:[%s1455_s8 + $0x38] sm:$0x3]  ;;  %v520_v60 = vperm.slane %v365_v50, 0  ;;  %v521_v63 = vperm.slane %v365_v50, 1 }
  0x5d   : > { %876 = vst [vmem:[%s1475_s20 + $0xd0] sm:$0xff] %v748_v38  ;;  %v257_v38 = vld [vmem:[%s1447_s14 + $0x178] sm:$0xff]  ;;  %v768_v44 = vadd.f32 %v512_v32, %v256_v34  ;;  %v522_v3 = vperm.slane %v366_v57, 0  ;;  %v523_v6 = vperm.slane %v366_v57, 1  ;;  %v370_v21 = vld [vmem:[%s1455_s8 + $0x40] sm:$0x3] }
  0x5e   : > { %877 = vst [vmem:[%s1475_s20 + $0xd8] sm:$0xff] %v749_v41  ;;  %v258_v41 = vld [vmem:[%s1447_s14 + $0x180] sm:$0xff]  ;;  %v769_v47 = vadd.f32 %v513_v35, %v257_v38  ;;  %v367_v0 = vld [vmem:[%s1455_s8 + $0x3a] sm:$0x3]  ;;  %v368_v7 = vld [vmem:[%s1455_s8 + $0x3c] sm:$0x3] }
  0x5f   : > { %878 = vst [vmem:[%s1475_s20 + $0xe0] sm:$0xff] %v750_v45  ;;  %v259_v45 = vld [vmem:[%s1447_s14 + $0x188] sm:$0xff]  ;;  %v770_v51 = vadd.f32 %v514_v39, %v258_v41  ;;  %v524_v10 = vperm.slane %v367_v0, 0  ;;  %v525_v13 = vperm.slane %v367_v0, 1  ;;  %v369_v14 = vld [vmem:[%s1455_s8 + $0x3e] sm:$0x3] }
  0x60   : > { %879 = vst [vmem:[%s1475_s20 + $0xe8] sm:$0xff] %v751_v48  ;;  %v260_v48 = vld [vmem:[%s1447_s14 + $0x190] sm:$0xff]  ;;  %v771_v54 = vadd.f32 %v515_v42, %v259_v45  ;;  %v526_v17 = vperm.slane %v368_v7, 0  ;;  %v527_v20 = vperm.slane %v368_v7, 1  ;;  %v528_v24 = vperm.slane %v369_v14, 0  ;;  %s979_s5 = scalar_lea.sflag [#allocation4], %s1441_s30 }
  0x61   : > { %880 = vst [vmem:[%s1475_s20 + $0xf0] sm:$0xff] %v752_v52  ;;  %v261_v52 = vld [vmem:[%s1447_s14 + $0x198] sm:$0xff]  ;;  %v772_v58 = vadd.f32 %v516_v46, %v260_v48  ;;  %v529_v27 = vperm.slane %v369_v14, 1  ;;  %v371_v28 = vld [vmem:[%s1455_s8 + $0x42] sm:$0x3]  ;;  %v530_v31 = vperm.slane %v370_v21, 0 }
  0x62   : > { %881 = vst [vmem:[%s1475_s20 + $0xf8] sm:$0xff] %v753_v55  ;;  %v262_v55 = vld [vmem:[%s1447_s14 + $0x1a0] sm:$0xff]  ;;  %v773_v61 = vadd.f32 %v517_v49, %v261_v52  ;;  %v531_v34 = vperm.slane %v370_v21, 1  ;;  %v532_v38 = vperm.slane %v371_v28, 0  ;;  %v533_v41 = vperm.slane %v371_v28, 1  ;;  %s1247_s24 = sshra.s32 %s995_s3, 4  ;;  %s1248_s24 = int_to_ptr.hbm [resolvable:$true] %s1247_s24 }
  0x63   : > { %882 = vst [vmem:[%s1475_s20 + $0x100] sm:$0xff] %v754_v59  ;;  %v263_v59 = vld [vmem:[%s1447_s14 + $0x1a8] sm:$0xff]  ;;  %v774_v1 = vadd.f32 %v518_v53, %v262_v55  ;;  %v372_v35 = vld [vmem:[%s1455_s8 + $0x44] sm:$0x3]  ;;  %v373_v42 = vld [vmem:[%s1455_s8 + $0x46] sm:$0x3]  ;;  %p1254_p9 = scmp.lt.s32.totalorder %s1248_s24, %s1820_s2 }
  0x64   : > { %883 = vst [vmem:[%s1475_s20 + $0x108] sm:$0xff] %v755_v62  ;;  %v264_v62 = vld [vmem:[%s1447_s14 + $0x1b0] sm:$0xff]  ;;  %v775_v4 = vadd.f32 %v519_v56, %v263_v59  ;;  %v534_v45 = vperm.slane %v372_v35, 0  ;;  %v535_v48 = vperm.slane %v372_v35, 1  ;;  %v374_v49 = vld [vmem:[%s1455_s8 + $0x48] sm:$0x3] }
  0x65   : > { %884 = vst [vmem:[%s1475_s20 + $0x110] sm:$0xff] %v756_v2  ;;  %v265_v2 = vld [vmem:[%s1447_s14 + $0x1b8] sm:$0xff]  ;;  %v776_v8 = vadd.f32 %v520_v60, %v264_v62  ;;  %v536_v52 = vperm.slane %v373_v42, 0  ;;  %v537_v55 = vperm.slane %v373_v42, 1  ;;  %v375_v56 = vld [vmem:[%s1455_s8 + $0x4a] sm:$0x3] }
  0x66   : > { %885 = vst [vmem:[%s1475_s20 + $0x118] sm:$0xff] %v757_v5  ;;  %v266_v5 = vld [vmem:[%s1447_s14 + $0x1c0] sm:$0xff]  ;;  %v777_v11 = vadd.f32 %v521_v63, %v265_v2  ;;  %v538_v59 = vperm.slane %v374_v49, 0  ;;  %v539_v62 = vperm.slane %v374_v49, 1  ;;  %v376_v63 = vld [vmem:[%s1455_s8 + $0x4c] sm:$0x3] }
  0x67   : > { %886 = vst [vmem:[%s1475_s20 + $0x120] sm:$0xff] %v758_v9  ;;  %v267_v9 = vld [vmem:[%s1447_s14 + $0x1c8] sm:$0xff]  ;;  %v778_v15 = vadd.f32 %v522_v3, %v266_v5  ;;  %v540_v2 = vperm.slane %v375_v56, 0  ;;  %v541_v5 = vperm.slane %v375_v56, 1  ;;  %s1249_s25 = scalar_lea.hbm %s1248_s24, 1024  ;;  %s1253_s27 = scalar_lea.hbm %s1820_s2, 4096 }
  0x68   : > { %887 = vst [vmem:[%s1475_s20 + $0x128] sm:$0xff] %v759_v12  ;;  %v268_v12 = vld [vmem:[%s1447_s14 + $0x1d0] sm:$0xff]  ;;  %v779_v18 = vadd.f32 %v523_v6, %v267_v9  ;;  %v377_v6 = vld [vmem:[%s1455_s8 + $0x4e] sm:$0x3]  ;;  %v542_v9 = vperm.slane %v376_v63, 0  ;;  %p1250_p6 = scmp.ne.s32.totalorder %s1248_s24, %s1249_s25  ;;  %p1255_p1 = scmp.lt.s32.totalorder %s1253_s27, %s1249_s25 }
  0x69   : > { %888 = vst [vmem:[%s1475_s20 + $0x130] sm:$0xff] %v760_v16  ;;  %v269_v16 = vld [vmem:[%s1447_s14 + $0x1d8] sm:$0xff]  ;;  %v780_v22 = vadd.f32 %v524_v10, %v268_v12  ;;  %v543_v12 = vperm.slane %v376_v63, 1 }
  0x6a   : > { %889 = vst [vmem:[%s1475_s20 + $0x138] sm:$0xff] %v761_v19  ;;  %v270_v19 = vld [vmem:[%s1447_s14 + $0x1e0] sm:$0xff]  ;;  %v781_v25 = vadd.f32 %v525_v13, %v269_v16  ;;  %v378_v13 = vld [vmem:[%s1455_s8 + $0x50] sm:$0x3]  ;;  %v544_v16 = vperm.slane %v377_v6, 0  ;;  %p1251_p12 = pnand %p1250_p6, %p1375_p10  ;;  %p1256_p3 = por %p1255_p1, %p1254_p9 }
  0x6b   : > { %890 = vst [vmem:[%s1475_s20 + $0x140] sm:$0xff] %v762_v23  ;;  %v271_v23 = vld [vmem:[%s1447_s14 + $0x1e8] sm:$0xff]  ;;  %v782_v29 = vadd.f32 %v526_v17, %v270_v19  ;;  %v545_v19 = vperm.slane %v377_v6, 1 }
  0x6c   : > { %891 = vst [vmem:[%s1475_s20 + $0x148] sm:$0xff] %v763_v26  ;;  %v272_v26 = vld [vmem:[%s1447_s14 + $0x1f0] sm:$0xff]  ;;  %v783_v32 = vadd.f32 %v527_v20, %v271_v23  ;;  %v546_v23 = vperm.slane %v378_v13, 0  ;;  %p1252_p2 = pneg %p1251_p12 }
  0x6d   : > { %892 = vst [vmem:[%s1475_s20 + $0x150] sm:$0xff] %v764_v30  ;;  %v273_v30 = vld [vmem:[%s1447_s14 + $0x1f8] sm:$0xff]  ;;  %v784_v36 = vadd.f32 %v528_v24, %v272_v26  ;;  %v379_v20 = vld [vmem:[%s1455_s8 + $0x52] sm:$0x3]  ;;  %v547_v26 = vperm.slane %v378_v13, 1 }
  0x6e   : > { %893 = vst [vmem:[%s1475_s20 + $0x158] sm:$0xff] %v765_v33  ;;  %v274_v33 = vld [vmem:[%s1447_s14 + $0x200] sm:$0xff]  ;;  %v785_v39 = vadd.f32 %v529_v27, %v273_v30  ;;  %v380_v27 = vld [vmem:[%s1455_s8 + $0x54] sm:$0x3]  ;;  %v548_v30 = vperm.slane %v379_v20, 0  ;;  %p1257_p13 = pnand %p1256_p3, %p1252_p2 }
  0x6f   : > { %894 = vst [vmem:[%s1475_s20 + $0x160] sm:$0xff] %v766_v37  ;;  %v275_v37 = vld [vmem:[%s1447_s14 + $0x208] sm:$0xff]  ;;  %v786_v43 = vadd.f32 %v530_v31, %v274_v33  ;;  %v549_v33 = vperm.slane %v379_v20, 1 }
  0x70   : > { %895 = vst [vmem:[%s1475_s20 + $0x168] sm:$0xff] %v767_v40  ;;  %v276_v40 = vld [vmem:[%s1447_s14 + $0x210] sm:$0xff]  ;;  %v787_v46 = vadd.f32 %v531_v34, %v275_v37  ;;  %v550_v37 = vperm.slane %v380_v27, 0 }
  0x71   : > { %896 = vst [vmem:[%s1475_s20 + $0x170] sm:$0xff] %v768_v44  ;;  %v277_v44 = vld [vmem:[%s1447_s14 + $0x218] sm:$0xff]  ;;  %v788_v50 = vadd.f32 %v532_v38, %v276_v40  ;;  %v381_v34 = vld [vmem:[%s1455_s8 + $0x56] sm:$0x3]  ;;  %v551_v40 = vperm.slane %v380_v27, 1 }
  0x72   : > { %897 = vst [vmem:[%s1475_s20 + $0x178] sm:$0xff] %v769_v47  ;;  %v278_v47 = vld [vmem:[%s1447_s14 + $0x220] sm:$0xff]  ;;  %v789_v53 = vadd.f32 %v533_v41, %v277_v44  ;;  %v382_v41 = vld [vmem:[%s1455_s8 + $0x58] sm:$0x3]  ;;  %v552_v44 = vperm.slane %v381_v34, 0 }
  0x73   : > { %898 = vst [vmem:[%s1475_s20 + $0x180] sm:$0xff] %v770_v51  ;;  %v279_v51 = vld [vmem:[%s1447_s14 + $0x228] sm:$0xff]  ;;  %v790_v57 = vadd.f32 %v534_v45, %v278_v47  ;;  %v553_v47 = vperm.slane %v381_v34, 1 }
  0x74   : > { %899 = vst [vmem:[%s1475_s20 + $0x188] sm:$0xff] %v771_v54  ;;  %v280_v54 = vld [vmem:[%s1447_s14 + $0x230] sm:$0xff]  ;;  %v791_v60 = vadd.f32 %v535_v48, %v279_v51  ;;  %v383_v48 = vld [vmem:[%s1455_s8 + $0x5a] sm:$0x3]  ;;  %v554_v51 = vperm.slane %v382_v41, 0 }
  0x75   : > { %900 = vst [vmem:[%s1475_s20 + $0x190] sm:$0xff] %v772_v58  ;;  %v281_v58 = vld [vmem:[%s1447_s14 + $0x238] sm:$0xff]  ;;  %v792_v0 = vadd.f32 %v536_v52, %v280_v54  ;;  %v555_v54 = vperm.slane %v382_v41, 1 }
  0x76   : > { %901 = vst [vmem:[%s1475_s20 + $0x198] sm:$0xff] %v773_v61  ;;  %v282_v61 = vld [vmem:[%s1447_s14 + $0x240] sm:$0xff]  ;;  %v793_v3 = vadd.f32 %v537_v55, %v281_v58  ;;  %v384_v55 = vld [vmem:[%s1455_s8 + $0x5c] sm:$0x3]  ;;  %v556_v58 = vperm.slane %v383_v48, 0 }
  0x77   : > { %902 = vst [vmem:[%s1475_s20 + $0x1a0] sm:$0xff] %v774_v1  ;;  %v283_v1 = vld [vmem:[%s1447_s14 + $0x248] sm:$0xff]  ;;  %v794_v7 = vadd.f32 %v538_v59, %v282_v61  ;;  %v557_v61 = vperm.slane %v383_v48, 1 }
  0x78   : > { %903 = vst [vmem:[%s1475_s20 + $0x1a8] sm:$0xff] %v775_v4  ;;  %v284_v4 = vld [vmem:[%s1447_s14 + $0x250] sm:$0xff]  ;;  %v795_v10 = vadd.f32 %v539_v62, %v283_v1  ;;  %v385_v62 = vld [vmem:[%s1455_s8 + $0x5e] sm:$0x3]  ;;  %v558_v1 = vperm.slane %v384_v55, 0 }
  0x79   : > { %904 = vst [vmem:[%s1475_s20 + $0x1b0] sm:$0xff] %v776_v8  ;;  %v285_v8 = vld [vmem:[%s1447_s14 + $0x258] sm:$0xff]  ;;  %v796_v14 = vadd.f32 %v540_v2, %v284_v4  ;;  %v559_v4 = vperm.slane %v384_v55, 1 }
  0x7a   : > { %905 = vst [vmem:[%s1475_s20 + $0x1b8] sm:$0xff] %v777_v11  ;;  %v286_v11 = vld [vmem:[%s1447_s14 + $0x260] sm:$0xff]  ;;  %v797_v17 = vadd.f32 %v541_v5, %v285_v8  ;;  %v560_v8 = vperm.slane %v385_v62, 0 }
  0x7b   : > { %906 = vst [vmem:[%s1475_s20 + $0x1c0] sm:$0xff] %v778_v15  ;;  %v287_v15 = vld [vmem:[%s1447_s14 + $0x268] sm:$0xff]  ;;  %v798_v21 = vadd.f32 %v542_v9, %v286_v11  ;;  %v386_v5 = vld [vmem:[%s1455_s8 + $0x60] sm:$0x3]  ;;  %v561_v11 = vperm.slane %v385_v62, 1 }
  0x7c   : > { %907 = vst [vmem:[%s1475_s20 + $0x1c8] sm:$0xff] %v779_v18  ;;  %v288_v18 = vld [vmem:[%s1447_s14 + $0x270] sm:$0xff]  ;;  %v799_v24 = vadd.f32 %v543_v12, %v287_v15  ;;  %v387_v12 = vld [vmem:[%s1455_s8 + $0x62] sm:$0x3]  ;;  %v562_v15 = vperm.slane %v386_v5, 0 }
  0x7d   : > { %908 = vst [vmem:[%s1475_s20 + $0x1d0] sm:$0xff] %v780_v22  ;;  %v289_v22 = vld [vmem:[%s1447_s14 + $0x278] sm:$0xff]  ;;  %v800_v28 = vadd.f32 %v544_v16, %v288_v18  ;;  %v563_v18 = vperm.slane %v386_v5, 1 }
  0x7e   : > { %909 = vst [vmem:[%s1475_s20 + $0x1d8] sm:$0xff] %v781_v25  ;;  %v290_v25 = vld [vmem:[%s1447_s14 + $0x280] sm:$0xff]  ;;  %v801_v31 = vadd.f32 %v545_v19, %v289_v22  ;;  %v564_v22 = vperm.slane %v387_v12, 0 }
  0x7f   : > { %910 = vst [vmem:[%s1475_s20 + $0x1e0] sm:$0xff] %v782_v29  ;;  %v291_v29 = vld [vmem:[%s1447_s14 + $0x288] sm:$0xff]  ;;  %v802_v35 = vadd.f32 %v546_v23, %v290_v25  ;;  %v388_v19 = vld [vmem:[%s1455_s8 + $0x64] sm:$0x3]  ;;  %v565_v25 = vperm.slane %v387_v12, 1 }
  0x80   : > { %911 = vst [vmem:[%s1475_s20 + $0x1e8] sm:$0xff] %v783_v32  ;;  %v292_v32 = vld [vmem:[%s1447_s14 + $0x290] sm:$0xff]  ;;  %v803_v38 = vadd.f32 %v547_v26, %v291_v29  ;;  %v389_v26 = vld [vmem:[%s1455_s8 + $0x66] sm:$0x3]  ;;  %v566_v29 = vperm.slane %v388_v19, 0 }
  0x81   : > { %912 = vst [vmem:[%s1475_s20 + $0x1f0] sm:$0xff] %v784_v36  ;;  %v293_v36 = vld [vmem:[%s1447_s14 + $0x298] sm:$0xff]  ;;  %v804_v42 = vadd.f32 %v548_v30, %v292_v32  ;;  %v567_v32 = vperm.slane %v388_v19, 1 }
  0x82   : > { %913 = vst [vmem:[%s1475_s20 + $0x1f8] sm:$0xff] %v785_v39  ;;  %v294_v39 = vld [vmem:[%s1447_s14 + $0x2a0] sm:$0xff]  ;;  %v805_v45 = vadd.f32 %v549_v33, %v293_v36  ;;  %v390_v33 = vld [vmem:[%s1455_s8 + $0x68] sm:$0x3]  ;;  %v568_v36 = vperm.slane %v389_v26, 0 }
  0x83   : > { %914 = vst [vmem:[%s1475_s20 + $0x200] sm:$0xff] %v786_v43  ;;  %v295_v43 = vld [vmem:[%s1447_s14 + $0x2a8] sm:$0xff]  ;;  %v806_v49 = vadd.f32 %v550_v37, %v294_v39  ;;  %v569_v39 = vperm.slane %v389_v26, 1 }
  0x84   : > { %915 = vst [vmem:[%s1475_s20 + $0x208] sm:$0xff] %v787_v46  ;;  %v296_v46 = vld [vmem:[%s1447_s14 + $0x2b0] sm:$0xff]  ;;  %v807_v52 = vadd.f32 %v551_v40, %v295_v43  ;;  %v391_v40 = vld [vmem:[%s1455_s8 + $0x6a] sm:$0x3]  ;;  %v570_v43 = vperm.slane %v390_v33, 0 }
  0x85   : > { %916 = vst [vmem:[%s1475_s20 + $0x210] sm:$0xff] %v788_v50  ;;  %v297_v50 = vld [vmem:[%s1447_s14 + $0x2b8] sm:$0xff]  ;;  %v808_v56 = vadd.f32 %v552_v44, %v296_v46  ;;  %v571_v46 = vperm.slane %v390_v33, 1 }
  0x86   : > { %917 = vst [vmem:[%s1475_s20 + $0x218] sm:$0xff] %v789_v53  ;;  %v298_v53 = vld [vmem:[%s1447_s14 + $0x2c0] sm:$0xff]  ;;  %v809_v59 = vadd.f32 %v553_v47, %v297_v50  ;;  %v392_v47 = vld [vmem:[%s1455_s8 + $0x6c] sm:$0x3]  ;;  %v572_v50 = vperm.slane %v391_v40, 0 }
  0x87   : > { %918 = vst [vmem:[%s1475_s20 + $0x220] sm:$0xff] %v790_v57  ;;  %v299_v57 = vld [vmem:[%s1447_s14 + $0x2c8] sm:$0xff]  ;;  %v810_v63 = vadd.f32 %v554_v51, %v298_v53  ;;  %v573_v53 = vperm.slane %v391_v40, 1 }
  0x88   : > { %919 = vst [vmem:[%s1475_s20 + $0x228] sm:$0xff] %v791_v60  ;;  %v300_v60 = vld [vmem:[%s1447_s14 + $0x2d0] sm:$0xff]  ;;  %v811_v2 = vadd.f32 %v555_v54, %v299_v57  ;;  %v393_v54 = vld [vmem:[%s1455_s8 + $0x6e] sm:$0x3]  ;;  %v574_v57 = vperm.slane %v392_v47, 0 }
  0x89   : > { %920 = vst [vmem:[%s1475_s20 + $0x230] sm:$0xff] %v792_v0  ;;  %v301_v0 = vld [vmem:[%s1447_s14 + $0x2d8] sm:$0xff]  ;;  %v812_v6 = vadd.f32 %v556_v58, %v300_v60  ;;  %v575_v60 = vperm.slane %v392_v47, 1 }
  0x8a   : > { %921 = vst [vmem:[%s1475_s20 + $0x238] sm:$0xff] %v793_v3  ;;  %v302_v3 = vld [vmem:[%s1447_s14 + $0x2e0] sm:$0xff]  ;;  %v813_v9 = vadd.f32 %v557_v61, %v301_v0  ;;  %v394_v61 = vld [vmem:[%s1455_s8 + $0x70] sm:$0x3]  ;;  %v576_v0 = vperm.slane %v393_v54, 0 }
  0x8b   : > { %922 = vst [vmem:[%s1475_s20 + $0x240] sm:$0xff] %v794_v7  ;;  %v303_v7 = vld [vmem:[%s1447_s14 + $0x2e8] sm:$0xff]  ;;  %v814_v13 = vadd.f32 %v558_v1, %v302_v3  ;;  %v577_v3 = vperm.slane %v393_v54, 1 }
  0x8c   : > { %923 = vst [vmem:[%s1475_s20 + $0x248] sm:$0xff] %v795_v10  ;;  %v304_v10 = vld [vmem:[%s1447_s14 + $0x2f0] sm:$0xff]  ;;  %v815_v16 = vadd.f32 %v559_v4, %v303_v7  ;;  %v578_v7 = vperm.slane %v394_v61, 0  ;;  %v335_v54 = vld [vmem:[%s1447_s14 + $0x3e8] sm:$0xff] }
  0x8d   : > { %924 = vst [vmem:[%s1475_s20 + $0x250] sm:$0xff] %v796_v14  ;;  %v305_v14 = vld [vmem:[%s1447_s14 + $0x2f8] sm:$0xff]  ;;  %v816_v20 = vadd.f32 %v560_v8, %v304_v10  ;;  %v395_v4 = vld [vmem:[%s1455_s8 + $0x72] sm:$0x3]  ;;  %v579_v10 = vperm.slane %v394_v61, 1 }
  0x8e   : > { %925 = vst [vmem:[%s1475_s20 + $0x258] sm:$0xff] %v797_v17  ;;  %v306_v17 = vld [vmem:[%s1447_s14 + $0x300] sm:$0xff]  ;;  %v817_v23 = vadd.f32 %v561_v11, %v305_v14  ;;  %v396_v11 = vld [vmem:[%s1455_s8 + $0x74] sm:$0x3]  ;;  %v580_v14 = vperm.slane %v395_v4, 0 }
  0x8f   : > { %926 = vst [vmem:[%s1475_s20 + $0x260] sm:$0xff] %v798_v21  ;;  %v307_v21 = vld [vmem:[%s1447_s14 + $0x308] sm:$0xff]  ;;  %v818_v27 = vadd.f32 %v562_v15, %v306_v17  ;;  %v581_v17 = vperm.slane %v395_v4, 1 }
  0x90   : > { %927 = vst [vmem:[%s1475_s20 + $0x268] sm:$0xff] %v799_v24  ;;  %v308_v24 = vld [vmem:[%s1447_s14 + $0x310] sm:$0xff]  ;;  %v819_v30 = vadd.f32 %v563_v18, %v307_v21  ;;  %v582_v21 = vperm.slane %v396_v11, 0 }
  0x91   : > { %928 = vst [vmem:[%s1475_s20 + $0x270] sm:$0xff] %v800_v28  ;;  %v309_v28 = vld [vmem:[%s1447_s14 + $0x318] sm:$0xff]  ;;  %v820_v34 = vadd.f32 %v564_v22, %v308_v24  ;;  %v397_v18 = vld [vmem:[%s1455_s8 + $0x76] sm:$0x3]  ;;  %v583_v24 = vperm.slane %v396_v11, 1 }
  0x92   : > { %929 = vst [vmem:[%s1475_s20 + $0x278] sm:$0xff] %v801_v31  ;;  %v310_v31 = vld [vmem:[%s1447_s14 + $0x320] sm:$0xff]  ;;  %v821_v37 = vadd.f32 %v565_v25, %v309_v28  ;;  %v398_v25 = vld [vmem:[%s1455_s8 + $0x78] sm:$0x3]  ;;  %v584_v28 = vperm.slane %v397_v18, 0 }
  0x93   : > { %930 = vst [vmem:[%s1475_s20 + $0x280] sm:$0xff] %v802_v35  ;;  %v311_v35 = vld [vmem:[%s1447_s14 + $0x328] sm:$0xff]  ;;  %v822_v41 = vadd.f32 %v566_v29, %v310_v31  ;;  %v585_v31 = vperm.slane %v397_v18, 1 }
  0x94   : > { %931 = vst [vmem:[%s1475_s20 + $0x288] sm:$0xff] %v803_v38  ;;  %v312_v38 = vld [vmem:[%s1447_s14 + $0x330] sm:$0xff]  ;;  %v823_v44 = vadd.f32 %v567_v32, %v311_v35  ;;  %v399_v32 = vld [vmem:[%s1455_s8 + $0x7a] sm:$0x3]  ;;  %v586_v35 = vperm.slane %v398_v25, 0 }
  0x95   : > { %932 = vst [vmem:[%s1475_s20 + $0x290] sm:$0xff] %v804_v42  ;;  %v313_v42 = vld [vmem:[%s1447_s14 + $0x338] sm:$0xff]  ;;  %v824_v48 = vadd.f32 %v568_v36, %v312_v38  ;;  %v587_v38 = vperm.slane %v398_v25, 1 }
  0x96   : > { %933 = vst [vmem:[%s1475_s20 + $0x298] sm:$0xff] %v805_v45  ;;  %v314_v45 = vld [vmem:[%s1447_s14 + $0x340] sm:$0xff]  ;;  %v825_v51 = vadd.f32 %v569_v39, %v313_v42  ;;  %v400_v39 = vld [vmem:[%s1455_s8 + $0x7c] sm:$0x3]  ;;  %v588_v42 = vperm.slane %v399_v32, 0 }
  0x97   : > { %934 = vst [vmem:[%s1475_s20 + $0x2a0] sm:$0xff] %v806_v49  ;;  %v315_v49 = vld [vmem:[%s1447_s14 + $0x348] sm:$0xff]  ;;  %v826_v55 = vadd.f32 %v570_v43, %v314_v45  ;;  %v589_v45 = vperm.slane %v399_v32, 1 }
  0x98   : > { %935 = vst [vmem:[%s1475_s20 + $0x2a8] sm:$0xff] %v807_v52  ;;  %v316_v52 = vld [vmem:[%s1447_s14 + $0x350] sm:$0xff]  ;;  %v827_v58 = vadd.f32 %v571_v46, %v315_v49  ;;  %v401_v46 = vld [vmem:[%s1455_s8 + $0x7e] sm:$0x3]  ;;  %v590_v49 = vperm.slane %v400_v39, 0 }
  0x99   : > { %936 = vst [vmem:[%s1475_s20 + $0x2b0] sm:$0xff] %v808_v56  ;;  %v317_v56 = vld [vmem:[%s1447_s14 + $0x358] sm:$0xff]  ;;  %v828_v62 = vadd.f32 %v572_v50, %v316_v52  ;;  %v591_v52 = vperm.slane %v400_v39, 1 }
  0x9a   : > { %937 = vst [vmem:[%s1475_s20 + $0x2b8] sm:$0xff] %v809_v59  ;;  %v318_v59 = vld [vmem:[%s1447_s14 + $0x360] sm:$0xff]  ;;  %v829_v1 = vadd.f32 %v573_v53, %v317_v56 }
  0x9b   : > { %938 = vst [vmem:[%s1475_s20 + $0x2c0] sm:$0xff] %v810_v63  ;;  %v319_v63 = vld [vmem:[%s1447_s14 + $0x368] sm:$0xff]  ;;  %v830_v5 = vadd.f32 %v574_v57, %v318_v59  ;;  %v336_v57 = vld [vmem:[%s1447_s14 + $0x3f0] sm:$0xff]  ;;  %v847_v61 = vadd.f32 %v591_v52, %v335_v54 }
  0x9c   : > { %939 = vst [vmem:[%s1475_s20 + $0x2c8] sm:$0xff] %v811_v2  ;;  %v320_v2 = vld [vmem:[%s1447_s14 + $0x370] sm:$0xff]  ;;  %v831_v8 = vadd.f32 %v575_v60, %v319_v63  ;;  %v337_v60 = vld [vmem:[%s1447_s14 + $0x3f8] sm:$0xff] }
  0x9d   : > { %940 = vst [vmem:[%s1475_s20 + $0x2d0] sm:$0xff] %v812_v6  ;;  %v321_v6 = vld [vmem:[%s1447_s14 + $0x378] sm:$0xff]  ;;  %v832_v12 = vadd.f32 %v576_v0, %v320_v2 }
  0x9e   : > { %941 = vst [vmem:[%s1475_s20 + $0x2d8] sm:$0xff] %v813_v9  ;;  %v322_v9 = vld [vmem:[%s1447_s14 + $0x380] sm:$0xff]  ;;  %v833_v15 = vadd.f32 %v577_v3, %v321_v6 }
  0x9f   : > { %942 = vst [vmem:[%s1475_s20 + $0x2e0] sm:$0xff] %v814_v13  ;;  %v323_v13 = vld [vmem:[%s1447_s14 + $0x388] sm:$0xff]  ;;  %v834_v19 = vadd.f32 %v578_v7, %v322_v9 }
  0xa0   : > { %943 = vst [vmem:[%s1475_s20 + $0x2e8] sm:$0xff] %v815_v16  ;;  %v324_v16 = vld [vmem:[%s1447_s14 + $0x390] sm:$0xff]  ;;  %v835_v22 = vadd.f32 %v579_v10, %v323_v13 }
  0xa1   : > { %944 = vst [vmem:[%s1475_s20 + $0x2f0] sm:$0xff] %v816_v20  ;;  %v325_v20 = vld [vmem:[%s1447_s14 + $0x398] sm:$0xff]  ;;  %v836_v26 = vadd.f32 %v580_v14, %v324_v16 }
  0xa2   : > { %945 = vst [vmem:[%s1475_s20 + $0x2f8] sm:$0xff] %v817_v23  ;;  %v326_v23 = vld [vmem:[%s1447_s14 + $0x3a0] sm:$0xff]  ;;  %v837_v29 = vadd.f32 %v581_v17, %v325_v20 }
  0xa3   : > { %946 = vst [vmem:[%s1475_s20 + $0x300] sm:$0xff] %v818_v27  ;;  %v327_v27 = vld [vmem:[%s1447_s14 + $0x3a8] sm:$0xff]  ;;  %v838_v33 = vadd.f32 %v582_v21, %v326_v23 }
  0xa4   : > { %947 = vst [vmem:[%s1475_s20 + $0x308] sm:$0xff] %v819_v30  ;;  %v328_v30 = vld [vmem:[%s1447_s14 + $0x3b0] sm:$0xff]  ;;  %v839_v36 = vadd.f32 %v583_v24, %v327_v27 }
  0xa5   : > { %948 = vst [vmem:[%s1475_s20 + $0x310] sm:$0xff] %v820_v34  ;;  %v329_v34 = vld [vmem:[%s1447_s14 + $0x3b8] sm:$0xff]  ;;  %v840_v40 = vadd.f32 %v584_v28, %v328_v30 }
  0xa6   : > { %949 = vst [vmem:[%s1475_s20 + $0x318] sm:$0xff] %v821_v37  ;;  %v330_v37 = vld [vmem:[%s1447_s14 + $0x3c0] sm:$0xff]  ;;  %v841_v43 = vadd.f32 %v585_v31, %v329_v34 }
  0xa7   : > { %950 = vst [vmem:[%s1475_s20 + $0x320] sm:$0xff] %v822_v41  ;;  %v331_v41 = vld [vmem:[%s1447_s14 + $0x3c8] sm:$0xff]  ;;  %v842_v47 = vadd.f32 %v586_v35, %v330_v37 }
  0xa8   : > { %951 = vst [vmem:[%s1475_s20 + $0x328] sm:$0xff] %v823_v44  ;;  %v332_v44 = vld [vmem:[%s1447_s14 + $0x3d0] sm:$0xff]  ;;  %v843_v50 = vadd.f32 %v587_v38, %v331_v41 }
  0xa9   : > { %952 = vst [vmem:[%s1475_s20 + $0x330] sm:$0xff] %v824_v48  ;;  %v333_v48 = vld [vmem:[%s1447_s14 + $0x3d8] sm:$0xff]  ;;  %v844_v53 = vadd.f32 %v588_v42, %v332_v44 }
  0xaa   : > { %953 = vst [vmem:[%s1475_s20 + $0x338] sm:$0xff] %v825_v51  ;;  %v334_v51 = vld [vmem:[%s1447_s14 + $0x3e0] sm:$0xff]  ;;  %v845_v56 = vadd.f32 %v589_v45, %v333_v48 }
  0xab   : > { %954 = vst [vmem:[%s1475_s20 + $0x340] sm:$0xff] %v826_v55  ;;  %v592_v55 = vperm.slane %v401_v46, 0  ;;  %v846_v59 = vadd.f32 %v590_v49, %v334_v51 }
  0xac   : > { %955 = vst [vmem:[%s1475_s20 + $0x348] sm:$0xff] %v827_v58  ;;  %v593_v58 = vperm.slane %v401_v46, 1 }
  0xad   : > { %956 = vst [vmem:[%s1475_s20 + $0x350] sm:$0xff] %v828_v62  ;;  %v848_v62 = vadd.f32 %v592_v55, %v336_v57 }
  0xae   : > { %957 = vst [vmem:[%s1475_s20 + $0x358] sm:$0xff] %v829_v1  ;;  %v849_v63 = vadd.f32 %v593_v58, %v337_v60 }
  0xaf   : > { %958 = vst [vmem:[%s1475_s20 + $0x360] sm:$0xff] %v830_v5 }
  0xb0   : > { %959 = vst [vmem:[%s1475_s20 + $0x368] sm:$0xff] %v831_v8 }
  0xb1   : > { %960 = vst [vmem:[%s1475_s20 + $0x370] sm:$0xff] %v832_v12 }
  0xb2   : > { %961 = vst [vmem:[%s1475_s20 + $0x378] sm:$0xff] %v833_v15 }
  0xb3   : > { %962 = vst [vmem:[%s1475_s20 + $0x380] sm:$0xff] %v834_v19 }
  0xb4   : > { %963 = vst [vmem:[%s1475_s20 + $0x388] sm:$0xff] %v835_v22 }
  0xb5   : > { %964 = vst [vmem:[%s1475_s20 + $0x390] sm:$0xff] %v836_v26 }
  0xb6   : > { %965 = vst [vmem:[%s1475_s20 + $0x398] sm:$0xff] %v837_v29 }
  0xb7   : > { %966 = vst [vmem:[%s1475_s20 + $0x3a0] sm:$0xff] %v838_v33 }
  0xb8   : > { %967 = vst [vmem:[%s1475_s20 + $0x3a8] sm:$0xff] %v839_v36 }
  0xb9   : > { %968 = vst [vmem:[%s1475_s20 + $0x3b0] sm:$0xff] %v840_v40 }
  0xba   : > { %969 = vst [vmem:[%s1475_s20 + $0x3b8] sm:$0xff] %v841_v43 }
  0xbb   : > { %970 = vst [vmem:[%s1475_s20 + $0x3c0] sm:$0xff] %v842_v47 }
  0xbc   : > { %971 = vst [vmem:[%s1475_s20 + $0x3c8] sm:$0xff] %v843_v50 }
  0xbd   : > { %972 = vst [vmem:[%s1475_s20 + $0x3d0] sm:$0xff] %v844_v53 }
  0xbe   : > { %973 = vst [vmem:[%s1475_s20 + $0x3d8] sm:$0xff] %v845_v56 }
  0xbf   : > { %974 = vst [vmem:[%s1475_s20 + $0x3e0] sm:$0xff] %v846_v59 }
  0xc0   : > { %975 = vst [vmem:[%s1475_s20 + $0x3e8] sm:$0xff] %v847_v61 }
  0xc1   : > { %976 = vst [vmem:[%s1475_s20 + $0x3f0] sm:$0xff] %v848_v62 }
  0xc2   : > { %977 = vst [vmem:[%s1475_s20 + $0x3f8] sm:$0xff] %v849_v63 }
  0xc3   : > { %1260 = shalt.err (!%p1257_p13)
}
  0xc4   : > { %s1309_s30 = smov 256   ;;  %s1310_s14 = smov 16  }
  0xc5   : > { %1120 = dma.vmem_to_hbm [thread:$0]  (%p1375_p10), %s993_s29, 16384, %s995_s3, %s979_s5, %s1309_s30, %s1309_s30, %s1310_s14  }
  0xc6 PF: > { %p1134_p0 = scmp.ge.s32.totalorder %s1303_s12, 2  ;;  %s1009_s4 = sand.u32 1, %s1291_s9  }
  0xc7   : > { %s1010_s26 = scalar_lea.sflag [#allocation4], %s1009_s4 }
  0xc8   : > { %p1130_p4 = pnand %p1134_p0, %p1379_p11 }
  0xca   : > { %p1131_p5 = pneg %p1130_p4 }
  0xcc   : > { %1286 = dma.done.wait (%p1131_p5), %s1010_s26, 16384  }
  0xcd   : > { %1288 = vsyncadd (%p1131_p5), %s1010_s26, 4294950912  ;;  %p18_p7 = scmp.ge.s32.totalorder %s1351_s15, 6   ;;  %s1827_s9 = smov %s1295_s10 }
  0xce   : > { %s1828_s10 = smov %s1299_s11  ;;  %s1829_s11 = smov %s1363_s18 }
  0xcf   : > { %s1830_s12 = smov %s1351_s15  ;;  %20 = sbr.rel (!%p18_p7) target bundleno = 7 (0x7), region = 86 }
  0xd4   :  { %1016 = vsyncpa [#allocation3], 1 }
  0xd5   :  { %1018 = vsyncpa [#allocation3 + $0x1], 1 }
  0xd6   :  { %1019 = vsyncpa [#allocation6], 1 }
  0xd7   :  { %1021 = vsyncpa [#allocation6 + $0x1], 1 }
  0xd8   :  { %1022 = vsyncpa [#allocation4], 1 }
  0xd9   :  { %1024 = vsyncpa [#allocation4 + $0x1], 1 }

</bundles_post_ra>
